<compile_context>
chip_gen: v6e
topology: v6e:2x2x1
jax: 0.10.0
libtpu: 0.0.40
codegen_flags: <defaults>
</compile_context>

<pallas_src>
import jax
import jax.numpy as jnp
from jax.experimental import pallas as pl
from jax.experimental.pallas import tpu as pltpu

ACTION_SPACE = 18
HIDDEN = 512
FILL = -1.0e9


def dqn_kernel(latent_ref, mask_ref, w_ref, b_ref, q_ref):
    A = mask_ref.shape[-1]

    x = latent_ref[...]                                  # (TB, 512) f32
    m = mask_ref[...] != 0                               # (TB, A)   bool

    # fused heads: (TB, 512) @ (512, A+1) -> (TB, A+1); columns = [advantage | value],
    # single MXU push with f32 accumulation.
    out = jnp.dot(x, w_ref[...], preferred_element_type=jnp.float32) + b_ref[...]
    a = out[:, :A]                                       # (TB, A) advantage
    v = out[:, A:A + 1]                                  # (TB, 1) value

    # apply_masks(a, mask, fill=0).sum(-1, keepdim=True) / mask.sum(-1, keepdim=True)
    mf = m.astype(jnp.float32)
    a_sum = jnp.sum(jnp.where(m, a, 0.0), axis=-1, keepdims=True)   # (TB, 1)
    mask_sum = jnp.sum(mf, axis=-1, keepdims=True)                  # (TB, 1)
    # EUP reciprocal (exact). max(.,1) guards all-False / Pallas-padded rows
    # (PyTorch would produce NaN there, but those entries are overwritten by FILL
    # or discarded, so observable semantics are preserved).
    a_mean = a_sum * pl.reciprocal(jnp.maximum(mask_sum, 1.0), approx=False)

    # apply_masks(v + a - a_mean, mask, fill=-1e9)
    q_ref[...] = jnp.where(m, v + a - a_mean, jnp.float32(FILL))


def _round_up(x, m):
    return (x + m - 1) // m * m


def _choose_batch_tile(B, block_b, min_steps=4):
    # Tiny batches (inference path): single tile - the kernel is launch-latency bound
    # and extra grid steps are pure overhead.
    if B <= min_steps * 128:
        return B
    # Large batches: aim for >= min_steps grid steps (double-buffer overlap + megacore
    # sharding on v7x), rows a multiple of 128, capped by the VMEM tile budget.
    return min(block_b, _round_up(pl.cdiv(B, min_steps), 128))


def _vmem_limit_bytes(tb, A):
    # double-buffered blocks: latent f32 + lane-padded int8 mask + lane-padded f32 out,
    # plus the resident fused weight/bias, plus headroom.  Floor 32 MiB / cap 48 MiB is
    # safe on v5e/v6e (128 MiB physical VMEM) and v7x (64 MiB physical).
    per_block = tb * (HIDDEN * 4 + 128 * 1 + 128 * 4)
    params = (HIDDEN + 1) * (A + 1) * 4
    est = 2 * per_block + params
    return int(min(max(est + (8 << 20), 32 << 20), 48 << 20))


def fuse_dqn_params(w_v, b_v, w_a, b_a):
    """One-time (model-build) fusion of the two heads: columns = [advantage | value]."""
    w_fused = jnp.concatenate([w_a, w_v], axis=1).astype(jnp.float32)        # (512, A+1)
    b_fused = jnp.concatenate([b_a, b_v]).reshape(1, -1).astype(jnp.float32)  # (1, A+1)
    return w_fused, b_fused


def dqn_forward(latent, mask, w_fused, b_fused, *, block_b=4096):
    """latent: (B, 512) f32; mask: (B, A) bool.  Returns q: (B, A) f32."""
    B, H = latent.shape
    A = b_fused.shape[-1] - 1
    assert H == HIDDEN and mask.shape == (B, A)

    tb = _choose_batch_tile(B, block_b)
    grid = (pl.cdiv(B, tb),)

    # int8 mask: 4x fewer HBM bytes / 4x smaller lane-padded VMEM block than int32;
    # the cast itself touches only ~A bytes per row (negligible).
    mask_i8 = mask.astype(jnp.int8)

    return pl.pallas_call(
        dqn_kernel,
        out_shape=jax.ShapeDtypeStruct((B, A), jnp.float32),
        grid=grid,
        in_specs=[
            pl.BlockSpec((tb, HIDDEN), lambda i: (i, 0)),      # latent (streamed f32)
            pl.BlockSpec((tb, A), lambda i: (i, 0)),           # mask   (streamed i8)
            pl.BlockSpec((HIDDEN, A + 1), lambda i: (0, 0)),   # fused W (VMEM-resident)
            pl.BlockSpec((1, A + 1), lambda i: (0, 0)),        # fused b (VMEM-resident)
        ],
        out_specs=pl.BlockSpec((tb, A), lambda i: (i, 0)),
        compiler_params=pltpu.CompilerParams(
            dimension_semantics=("parallel",),   # shard batch tiles across TCs on v7x
            vmem_limit_bytes=_vmem_limit_bytes(tb, A),
        ),
    )(latent, mask_i8, w_fused, b_fused)


def reference_forward(latent, mask, w_v, b_v, w_a, b_a):
    v = latent @ w_v + b_v                     # (B, 1)
    a = latent @ w_a + b_a                     # (B, A)
    a_sum = jnp.sum(jnp.where(mask, a, 0.0), axis=-1, keepdims=True)
    mask_sum = jnp.sum(mask.astype(jnp.float32), axis=-1, keepdims=True)
    a_mean = a_sum / mask_sum
    return jnp.where(mask, v + a - a_mean, jnp.float32(FILL))


if __name__ == "__main__":
    key = jax.random.PRNGKey(0)
    k_wv, k_bv, k_wa, k_ba, k_lat1, k_mask1, k_lat2, k_mask2 = jax.random.split(key, 8)

    # deterministic synthetic parameters (nn.Linear-like scale), stored as (in, out)
    bound = 1.0 / jnp.sqrt(jnp.float32(HIDDEN))
    w_v = jax.random.uniform(k_wv, (HIDDEN, 1), jnp.float32, -bound, bound)
    b_v = jax.random.uniform(k_bv, (1,), jnp.float32, -bound, bound)
    w_a = jax.random.uniform(k_wa, (HIDDEN, ACTION_SPACE), jnp.float32, -bound, bound)
    b_a = jax.random.uniform(k_ba, (ACTION_SPACE,), jnp.float32, -bound, bound)

    # head fusion hoisted out of the per-call path (done once at model-build time)
    w_fused, b_fused = fuse_dqn_params(w_v, b_v, w_a, b_a)

    def check(B, k_lat, k_mask):
        latent = jax.random.normal(k_lat, (B, HIDDEN), dtype=jnp.float32)
        mask = jax.random.bernoulli(k_mask, p=0.5, shape=(B, ACTION_SPACE))
        mask = mask.at[:, 0].set(True)   # at least one valid action per row
        q = jax.block_until_ready(dqn_forward(latent, mask, w_fused, b_fused))
        q_ref = reference_forward(latent, mask, w_v, b_v, w_a, b_a)
        assert q.shape == (B, ACTION_SPACE)
        # both kernel and reference use the TPU default MXU precision for the f32 dot,
        # so only small accumulation-order differences remain.
        assert jnp.allclose(q, q_ref, atol=2e-2, rtol=2e-2), f"mismatch vs reference (B={B})"

    check(8, k_lat1, k_mask1)       # small-batch inference path (single tile)
    check(1024, k_lat2, k_mask2)    # tiled/pipelined path (grid of 4 steps)

    print("KERNEL_OK")
</pallas_src>

<mosaic_0001>
module attributes {stable_mosaic.version = 11 : i64} {
  func.func @dqn_kernel(%arg0: i32, %arg1: memref<8x512xf32, #tpu.memory_space<vmem>>, %arg2: memref<8x18xi8, #tpu.memory_space<vmem>>, %arg3: memref<512x19xf32, #tpu.memory_space<vmem>>, %arg4: memref<1x19xf32, #tpu.memory_space<vmem>>, %arg5: memref<8x18xf32, #tpu.memory_space<vmem>>) attributes {dimension_semantics = [#tpu.dimension_semantics<parallel>], iteration_bounds = array<i64: 1>, scalar_prefetch = 0 : i64, scratch_operands = 0 : i64, tpu.core_type = #tpu.core_type<tc>, window_params = [{transform_indices = @transform_0, window_bounds = array<i64: 8, 512>}, {transform_indices = @transform_1, window_bounds = array<i64: 8, 18>}, {pipeline_mode = #tpu.pipeline_mode<synchronous>, transform_indices = @transform_2, window_bounds = array<i64: 512, 19>}, {pipeline_mode = #tpu.pipeline_mode<synchronous>, transform_indices = @transform_3, window_bounds = array<i64: 1, 19>}, {transform_indices = @transform_4, window_bounds = array<i64: 8, 18>}]} {
    %c0 = arith.constant 0 : index
    %c0_0 = arith.constant 0 : index
    %0 = vector.load %arg1[%c0, %c0_0] : memref<8x512xf32, #tpu.memory_space<vmem>>, vector<8x512xf32>
    %c0_1 = arith.constant 0 : index
    %c0_2 = arith.constant 0 : index
    %1 = vector.load %arg2[%c0_1, %c0_2] : memref<8x18xi8, #tpu.memory_space<vmem>>, vector<8x18xi8>
    %c0_i8 = arith.constant 0 : i8
    %2 = vector.broadcast %c0_i8 : i8 to vector<8x18xi8>
    %3 = arith.cmpi ne, %1, %2 : vector<8x18xi8>
    %c0_3 = arith.constant 0 : index
    %c0_4 = arith.constant 0 : index
    %4 = vector.load %arg3[%c0_3, %c0_4] : memref<512x19xf32, #tpu.memory_space<vmem>>, vector<512x19xf32>
    %cst = arith.constant dense<0.000000e+00> : vector<8x19xf32>
    %5 = tpu.matmul %0, %4, %cst {dimension_numbers = #tpu.dot_dimension_numbers<[1], [0], [0], [1], [0, 0, 1, 1], [], []>} : vector<8x512xf32>, vector<512x19xf32>, vector<8x19xf32> -> vector<8x19xf32>
    %c0_5 = arith.constant 0 : index
    %c0_6 = arith.constant 0 : index
    %6 = vector.load %arg4[%c0_5, %c0_6] : memref<1x19xf32, #tpu.memory_space<vmem>>, vector<1x19xf32>
    %7 = vector.broadcast %6 : vector<1x19xf32> to vector<8x19xf32>
    %8 = arith.addf %5, %7 : vector<8x19xf32>
    %9 = vector.extract_strided_slice %8 {offsets = [0, 0], sizes = [8, 18], strides = [1, 1]} : vector<8x19xf32> to vector<8x18xf32>
    %10 = vector.extract_strided_slice %8 {offsets = [0, 18], sizes = [8, 1], strides = [1, 1]} : vector<8x19xf32> to vector<8x1xf32>
    %11 = arith.extui %3 : vector<8x18xi1> to vector<8x18xi32>
    %12 = arith.sitofp %11 : vector<8x18xi32> to vector<8x18xf32>
    %cst_7 = arith.constant 0.000000e+00 : f32
    %13 = vector.broadcast %cst_7 : f32 to vector<8x18xf32>
    %14 = arith.select %3, %9, %13 : vector<8x18xi1>, vector<8x18xf32>
    %cst_8 = arith.constant dense<0.000000e+00> : vector<8xf32>
    %15 = vector.multi_reduction <add>, %14, %cst_8 [1] : vector<8x18xf32> to vector<8xf32>
    %16 = vector.shape_cast %15 : vector<8xf32> to vector<8x1xf32>
    %cst_9 = arith.constant dense<0.000000e+00> : vector<8xf32>
    %17 = vector.multi_reduction <add>, %12, %cst_9 [1] : vector<8x18xf32> to vector<8xf32>
    %18 = vector.shape_cast %17 : vector<8xf32> to vector<8x1xf32>
    %cst_10 = arith.constant 1.000000e+00 : f32
    %19 = vector.broadcast %cst_10 : f32 to vector<8x1xf32>
    %20 = arith.maximumf %18, %19 : vector<8x1xf32>
    %21 = tpu.reciprocal %20 : vector<8x1xf32> -> vector<8x1xf32>
    %22 = arith.mulf %16, %21 : vector<8x1xf32>
    %23 = vector.broadcast %10 : vector<8x1xf32> to vector<8x18xf32>
    %24 = arith.addf %23, %9 : vector<8x18xf32>
    %25 = vector.broadcast %22 : vector<8x1xf32> to vector<8x18xf32>
    %26 = arith.subf %24, %25 : vector<8x18xf32>
    %cst_11 = arith.constant -1.000000e+09 : f32
    %27 = vector.broadcast %cst_11 : f32 to vector<8x18xf32>
    %28 = arith.select %3, %26, %27 : vector<8x18xi1>, vector<8x18xf32>
    %c0_12 = arith.constant 0 : index
    %c0_13 = arith.constant 0 : index
    %29 = vector.load %arg5[%c0_12, %c0_13] : memref<8x18xf32, #tpu.memory_space<vmem>>, vector<8x18xf32>
    tpu.vector_store %arg5[%c0_12, %c0_13], %28 {strides = array<i32>} : memref<8x18xf32, #tpu.memory_space<vmem>>, vector<8x18xf32>,
    return
  }
  func.func @transform_0(%arg0: i32) -> (i32, i32) {
    %c0_i32 = arith.constant 0 : i32
    %c0_i32_0 = arith.constant 0 : i32
    return %arg0, %c0_i32 : i32, i32
  }
  func.func @transform_1(%arg0: i32) -> (i32, i32) {
    %c0_i32 = arith.constant 0 : i32
    %c0_i32_0 = arith.constant 0 : i32
    return %arg0, %c0_i32 : i32, i32
  }
  func.func @transform_2(%arg0: i32) -> (i32, i32) {
    %c0_i32 = arith.constant 0 : i32
    %c0_i32_0 = arith.constant 0 : i32
    %c0_i32_1 = arith.constant 0 : i32
    return %c0_i32, %c0_i32_0 : i32, i32
  }
  func.func @transform_3(%arg0: i32) -> (i32, i32) {
    %c0_i32 = arith.constant 0 : i32
    %c0_i32_0 = arith.constant 0 : i32
    %c0_i32_1 = arith.constant 0 : i32
    return %c0_i32, %c0_i32_0 : i32, i32
  }
  func.func @transform_4(%arg0: i32) -> (i32, i32) {
    %c0_i32 = arith.constant 0 : i32
    %c0_i32_0 = arith.constant 0 : i32
    return %arg0, %c0_i32 : i32, i32
  }
}

</mosaic_0001>

<bundles_post_ra>
// kernel: tpu_custom_call.1
= control target key start
LH: loop header
LB: loop body
LE: loop exit
PB: predicated region body
PF: predicated region fallthrough
CT: control target
= control target key end

     0   :  { %s633_s0 = inlined_call_operand.vmem [shape: f32[8,512], index: 0, kind: input, shape index: {}]   ;;  %s634_s1 = inlined_call_operand.vmem [shape: s8[8,18], index: 1, kind: input, shape index: {}]   ;;  %s635_s2 = inlined_call_operand.vmem [shape: f32[512,19], index: 2, kind: input, shape index: {}]   ;;  %s636_s3 = inlined_call_operand.vmem [shape: f32[1,19], index: 3, kind: input, shape index: {}]   ;;  %s637_s4 = inlined_call_operand.hbm [shape: f32[8,18], index: 4, kind: output, shape index: {}]  }
   0x1   :  { %v57_v0 = vld [vmem:[%s635_s2 + $0xf8] sm:$0xff]  ;;  %v56_v4 = vld [vmem:[%s635_s2 + $0xf0] sm:$0xff]  ;;  %v55_v8 = vld [vmem:[%s635_s2 + $0xe8] sm:$0xff] }
   0x2   :  { %v89_v1 = vld [vmem:[%s635_s2 + $0x1f8] sm:$0xff]  ;;  %278 = vmatprep.subr.mxu0 %v57_v0  ;;  %v88_v5 = vld [vmem:[%s635_s2 + $0x1f0] sm:$0xff]  ;;  %v87_v9 = vld [vmem:[%s635_s2 + $0x1e8] sm:$0xff] }
   0x3   :  { %v41_v2 = vld [vmem:[%s635_s2 + $0x78] sm:$0xff]  ;;  %313 = vmatprep.subr.mxu1 %v89_v1  ;;  %v40_v6 = vld [vmem:[%s635_s2 + $0x70] sm:$0xff]  ;;  %v39_v10 = vld [vmem:[%s635_s2 + $0x68] sm:$0xff] }
   0x4   :  { %v73_v3 = vld [vmem:[%s635_s2 + $0x178] sm:$0xff]  ;;  %279 = vmatpush3.msra.mxu0 %v41_v2  ;;  %v72_v7 = vld [vmem:[%s635_s2 + $0x170] sm:$0xff]  ;;  %v71_v11 = vld [vmem:[%s635_s2 + $0x168] sm:$0xff] }
   0x5   :  { %314 = vmatpush3.msra.mxu1 %v73_v3  ;;  %280 = vmatprep.subr.mxu0 %v56_v4  ;;  %v54_v12 = vld [vmem:[%s635_s2 + $0xe0] sm:$0xff]  ;;  %v53_v16 = vld [vmem:[%s635_s2 + $0xd8] sm:$0xff]  ;;  %v52_v20 = vld [vmem:[%s635_s2 + $0xd0] sm:$0xff] }
   0x6   :  { %315 = vmatprep.subr.mxu1 %v88_v5  ;;  %281 = vmatpush3.msra.mxu0 %v40_v6  ;;  %v86_v13 = vld [vmem:[%s635_s2 + $0x1e0] sm:$0xff]  ;;  %v85_v17 = vld [vmem:[%s635_s2 + $0x1d8] sm:$0xff]  ;;  %v84_v21 = vld [vmem:[%s635_s2 + $0x1d0] sm:$0xff] }
   0x7   :  { %316 = vmatpush3.msra.mxu1 %v72_v7  ;;  %282 = vmatprep.subr.mxu0 %v55_v8  ;;  %v38_v14 = vld [vmem:[%s635_s2 + $0x60] sm:$0xff]  ;;  %v37_v18 = vld [vmem:[%s635_s2 + $0x58] sm:$0xff]  ;;  %v36_v22 = vld [vmem:[%s635_s2 + $0x50] sm:$0xff] }
   0x8   :  { %317 = vmatprep.subr.mxu1 %v87_v9  ;;  %v70_v15 = vld [vmem:[%s635_s2 + $0x160] sm:$0xff]  ;;  %283 = vmatpush3.msra.mxu0 %v39_v10  ;;  %v69_v19 = vld [vmem:[%s635_s2 + $0x158] sm:$0xff]  ;;  %v68_v23 = vld [vmem:[%s635_s2 + $0x150] sm:$0xff] }
   0x9   :  { %318 = vmatpush3.msra.mxu1 %v71_v11  ;;  %284 = vmatprep.subr.mxu0 %v54_v12  ;;  %v51_v24 = vld [vmem:[%s635_s2 + $0xc8] sm:$0xff]  ;;  %v50_v28 = vld [vmem:[%s635_s2 + $0xc0] sm:$0xff]  ;;  %v49_v32 = vld [vmem:[%s635_s2 + $0xb8] sm:$0xff] }
   0xa   :  { %319 = vmatprep.subr.mxu1 %v86_v13  ;;  %285 = vmatpush3.msra.mxu0 %v38_v14  ;;  %v83_v25 = vld [vmem:[%s635_s2 + $0x1c8] sm:$0xff]  ;;  %v82_v29 = vld [vmem:[%s635_s2 + $0x1c0] sm:$0xff]  ;;  %v81_v33 = vld [vmem:[%s635_s2 + $0x1b8] sm:$0xff] }
   0xb   :  { %320 = vmatpush3.msra.mxu1 %v70_v15  ;;  %286 = vmatprep.subr.mxu0 %v53_v16  ;;  %v35_v26 = vld [vmem:[%s635_s2 + $0x48] sm:$0xff]  ;;  %v34_v30 = vld [vmem:[%s635_s2 + $0x40] sm:$0xff]  ;;  %v33_v34 = vld [vmem:[%s635_s2 + $0x38] sm:$0xff] }
   0xc   :  { %321 = vmatprep.subr.mxu1 %v85_v17  ;;  %287 = vmatpush3.msra.mxu0 %v37_v18  ;;  %v67_v27 = vld [vmem:[%s635_s2 + $0x148] sm:$0xff]  ;;  %v66_v31 = vld [vmem:[%s635_s2 + $0x140] sm:$0xff]  ;;  %v65_v35 = vld [vmem:[%s635_s2 + $0x138] sm:$0xff] }
   0xd   :  { %322 = vmatpush3.msra.mxu1 %v69_v19  ;;  %288 = vmatprep.subr.mxu0 %v52_v20  ;;  %v48_v36 = vld [vmem:[%s635_s2 + $0xb0] sm:$0xff]  ;;  %v47_v40 = vld [vmem:[%s635_s2 + $0xa8] sm:$0xff]  ;;  %v46_v44 = vld [vmem:[%s635_s2 + $0xa0] sm:$0xff] }
   0xe   :  { %323 = vmatprep.subr.mxu1 %v84_v21  ;;  %289 = vmatpush3.msra.mxu0 %v36_v22  ;;  %v80_v37 = vld [vmem:[%s635_s2 + $0x1b0] sm:$0xff]  ;;  %v79_v41 = vld [vmem:[%s635_s2 + $0x1a8] sm:$0xff]  ;;  %v78_v45 = vld [vmem:[%s635_s2 + $0x1a0] sm:$0xff] }
   0xf   :  { %324 = vmatpush3.msra.mxu1 %v68_v23  ;;  %290 = vmatprep.subr.mxu0 %v51_v24  ;;  %v32_v38 = vld [vmem:[%s635_s2 + $0x30] sm:$0xff]  ;;  %v31_v42 = vld [vmem:[%s635_s2 + $0x28] sm:$0xff]  ;;  %v30_v46 = vld [vmem:[%s635_s2 + $0x20] sm:$0xff] }
  0x10   :  { %325 = vmatprep.subr.mxu1 %v83_v25  ;;  %291 = vmatpush3.msra.mxu0 %v35_v26  ;;  %v64_v39 = vld [vmem:[%s635_s2 + $0x130] sm:$0xff]  ;;  %v63_v43 = vld [vmem:[%s635_s2 + $0x128] sm:$0xff]  ;;  %v62_v47 = vld [vmem:[%s635_s2 + $0x120] sm:$0xff] }
  0x11   :  { %326 = vmatpush3.msra.mxu1 %v67_v27  ;;  %292 = vmatprep.subr.mxu0 %v50_v28  ;;  %v45_v48 = vld [vmem:[%s635_s2 + $0x98] sm:$0xff]  ;;  %v24_v50 = vld [vmem:[%s634_s1] sm:$0x3] }
  0x12   :  { %327 = vmatprep.subr.mxu1 %v82_v29  ;;  %293 = vmatpush3.msra.mxu0 %v34_v30  ;;  %v77_v49 = vld [vmem:[%s635_s2 + $0x198] sm:$0xff]  ;;  %vm25_vm0 = vnez %v24_v50 }
  0x13   :  { %328 = vmatpush3.msra.mxu1 %v66_v31  ;;  %294 = vmatprep.subr.mxu0 %v49_v32  ;;  %v29_v51 = vld [vmem:[%s635_s2 + $0x18] sm:$0xff] }
  0x14   :  { %329 = vmatprep.subr.mxu1 %v81_v33  ;;  %295 = vmatpush3.msra.mxu0 %v33_v34  ;;  %v61_v52 = vld [vmem:[%s635_s2 + $0x118] sm:$0xff] }
  0x15   :  { %330 = vmatpush3.msra.mxu1 %v65_v35  ;;  %296 = vmatprep.subr.mxu0 %v48_v36 }
  0x16   :  { %331 = vmatprep.subr.mxu1 %v80_v37  ;;  %297 = vmatpush3.msra.mxu0 %v32_v38 }
  0x17   :  { %332 = vmatpush3.msra.mxu1 %v64_v39  ;;  %298 = vmatprep.subr.mxu0 %v47_v40 }
  0x18   :  { %333 = vmatprep.subr.mxu1 %v79_v41  ;;  %299 = vmatpush3.msra.mxu0 %v31_v42 }
  0x19   :  { %334 = vmatpush3.msra.mxu1 %v63_v43  ;;  %300 = vmatprep.subr.mxu0 %v46_v44 }
  0x1a   :  { %335 = vmatprep.subr.mxu1 %v78_v45 }
  0x1b   :  { %9 = vsyncpa [#allocation3], 0  ;;  %301 = vmatpush3.msra.mxu0 %v30_v46  ;;  %336 = vmatpush3.msra.mxu1 %v62_v47  ;;  %v44_v53 = vld [vmem:[%s635_s2 + $0x90] sm:$0xff]  ;;  %v378_v55 = vmov 0   ;;  %v43_v60 = vld [vmem:[%s635_s2 + $0x88] sm:$0xff]  ;;  %v379_v5 = vmov 0.0  }
  0x1c   :  { %v76_v54 = vld [vmem:[%s635_s2 + $0x190] sm:$0xff]  ;;  %v237_v56 = vsel %vm25_vm0, 16843009, %v378_v55  ;;  %302 = vmatprep.subr.mxu0 %v45_v48  ;;  %337 = vmatprep.subr.mxu1 %v77_v49  ;;  %v75_v61 = vld [vmem:[%s635_s2 + $0x188] sm:$0xff]  ;;  %v42_v1 = vld [vmem:[%s635_s2 + $0x80] sm:$0xff]  ;;  %vm243_vm2 = vcmask 146432  }
  0x1d   :  { %v28_v57 = vld [vmem:[%s635_s2 + $0x10] sm:$0xff]  ;;  %v238_v59 = vunpack.c.0.s8 %v237_v56  ;;  %303 = vmatpush3.msra.mxu0 %v29_v51  ;;  %338 = vmatpush3.msra.mxu1 %v61_v52  ;;  %v27_v62 = vld [vmem:[%s635_s2 + $0x8] sm:$0xff]  ;;  %v74_v2 = vld [vmem:[%s635_s2 + $0x180] sm:$0xff]  ;;  %v380_v12 = vmov 18  }
  0x1e   :  { %v60_v58 = vld [vmem:[%s635_s2 + $0x110] sm:$0xff]  ;;  %304 = vmatprep.subr.mxu0 %v44_v53  ;;  %339 = vmatprep.subr.mxu1 %v76_v54  ;;  %v59_v63 = vld [vmem:[%s635_s2 + $0x108] sm:$0xff]  ;;  %v26_v3 = vld [vmem:[%s635_s2] sm:$0xff] }
  0x1f   :  { %vm590_vm1 = vcmp.ne.s32.totalorder %v238_v59, 0  ;;  %305 = vmatpush3.msra.mxu0 %v28_v57  ;;  %340 = vmatpush3.msra.mxu1 %v60_v58  ;;  %v21_v4 = vld [vmem:[%s633_s0 + $0x8] sm:$0xff]  ;;  %v58_v7 = vld [vmem:[%s635_s2 + $0x100] sm:$0xff]  ;;  %v23_v8 = vld [vmem:[%s633_s0 + $0x18] sm:$0xff] }
  0x20   :  { %306 = vmatprep.subr.mxu0 %v43_v60  ;;  %341 = vmatprep.subr.mxu1 %v75_v61  ;;  %v277_v6 = vsel %vm590_vm1, 1.0, %v379_v5  ;;  %v20_v9 = vld [vmem:[%s633_s0] sm:$0xff]  ;;  %v22_v10 = vld [vmem:[%s633_s0 + $0x10] sm:$0xff]  ;;  %s381_s0 = smov [#allocation2]  }
  0x21   :  { %307 = vmatpush3.msra.mxu0 %v27_v62  ;;  %342 = vmatpush3.msra.mxu1 %v59_v63  ;;  %v247_v11 = vsel %vm243_vm2, %v277_v6, 0.0  ;;  %v276_v15 = vld [vmem:[%s636_s3] ss:$0 sm:$0xff]  ;;  %s268_s3 = sshll.u32 %s381_s0, 4  ;;  %s269_s3 = int_to_ptr.vmem [resolvable:$true] %s268_s3 }
  0x22   :  { %308 = vmatprep.subr.mxu0 %v42_v1  ;;  %343 = vmatprep.subr.mxu1 %v74_v2  ;;  %s356_s22 = scalar_lea.vmem %s269_s3, 128  ;;  %p361_p1 = scmp.lt.s32.totalorder %s269_s3, %s269_s3 }
  0x23   :  { %309 = vmatpush3.msra.mxu0 %v26_v3  ;;  %161 = vmatprep.mubr.f32.mxu0 %v21_v4  ;;  %p357_p0 = scmp.ne.s32.totalorder %s269_s3, %s356_s22  ;;  %p362_p2 = scmp.lt.s32.totalorder %s356_s22, %s356_s22 }
  0x24   :  { %344 = vmatpush3.msra.mxu1 %v58_v7  ;;  %231 = vmatprep.mubr.f32.mxu1 %v23_v8 }
  0x25   :  { %162 = vmatmul.mubr.f32.vlgmr.msra.gmra.mxu0 %v20_v9  ;;  %232 = vmatmul.mubr.f32.vlgmr.msra.gmra.mxu1 %v22_v10  ;;  %p363_p3 = por %p362_p2, %p361_p1 }
  0x26   :  { %248 = vadd.xlane.f32.xlu0 %v247_v11  ;;  %352 = vset.pattern.permute.xlu1 %v380_v12 }
  0x27   :  { %353 = vset.pattern.permute.xlu0 %v380_v12  ;;  %p364_p4 = pnand %p363_p3, %p357_p0 }
  0xaf   :  { %v249_v24 = vpop.xlane.xlu0 %248 }
  0xb0   :  { %v250_v25 = vmax.f32 %v249_v24, 1.0 }
  0xb2   :  { %354 = vrcp.f32 %v250_v25 }
  0xbf   :  { %v355_v26 = vpop.eup %354 }
  0xe5   :  { %v310_v13 = vpop.f32.mrf.mxu0  ;;  %v345_v14 = vpop.f32.mrf.mxu1 }
  0xe7   :  { %v311_v16 = vpop.f32.mrf.mxu0  ;;  %v346_v17 = vpop.f32.mrf.mxu1 }
  0xe8   :  { %v312_v18 = vadd.f32 %v311_v16, %v310_v13  ;;  %v347_v20 = vadd.f32 %v346_v17, %v345_v14 }
  0xea   :  { %v164_v19 = vadd.f32 %v312_v18, %v276_v15 }
  0xec   :  { %v234_v21 = vadd.f32 %v347_v20, %v164_v19 }
  0xee   :  { %255 = vperm.xlu1 %352, %v234_v21   ;;  %v242_v22 = vsel %vm590_vm1, %v234_v21, 0.0 }
  0xef   :  { %v244_v23 = vsel %vm243_vm2, %v242_v22, 0.0 }
  0xf0   :  { %245 = vadd.xlane.f32.xlu0 %v244_v23 }
 0x169   :  { %v256_v27 = vpop.permute.xlu1 %255 }
 0x16a   :  { %v258_v29 = vadd.f32 %v256_v27, %v234_v21 }
 0x179   :  { %v246_v28 = vpop.xlane.xlu0 %245 }
 0x17a   :  { %v252_v30 = vmul.f32 %v355_v26, %v246_v28 }
 0x17c   :  { %v259_v31 = vsub.f32 %v258_v29, %v252_v30 }
 0x17e   :  { %v260_v32 = vsel %vm590_vm1, %v259_v31, -1e+09 }
 0x17f   :  { %261 = vst.msk [vmem:[#allocation2] sm:$0xff] %vm243_vm2, %v260_v32 }
 0x180   :  { %367 = shalt.err (!%p364_p4)
}
 0x181   :  { %271 = dma.vmem_to_hbm [thread:$0]  %s269_s3, 128, %s637_s4, [#allocation3]  }
 0x182   :  { %376 = dma.done.wait [#allocation3], 128  }
 0x183   :  { %377 = vsyncadd [#allocation3], 4294967168 }
 0x184   :  { %275 = vsyncpa [#allocation3], 1 }

</bundles_post_ra>
